<compile_context>
chip_gen: v7x
topology: tpu7x:2x2x1
jax: 0.10.0
libtpu: 0.0.40
codegen_flags: <defaults>
</compile_context>

<pallas_src>
import jax
import jax.numpy as jnp
from jax.experimental import pallas as pl
from jax.experimental.pallas import tpu as pltpu

_NEG_SLOPE = 0.2


def _leaky_relu(x, slope=_NEG_SLOPE):
    # Identical to where(x>0, x, slope*x) for 0 < slope < 1; fewer VALU ops.
    return jnp.maximum(x, slope * x)


def _round_up(x, m):
    return (x + m - 1) // m * m


def _choose_tile(batch, block_b):
    """Batch tile: 8-aligned; large batches use big 256-multiple tiles but keep
    the grid length >= 2 so the batch axis can shard across both v7x cores."""
    b8 = _round_up(batch, 8)
    if b8 <= 256:
        return b8                      # tiny batch: one small tile, minimal padding
    cap = max(256, _round_up(block_b, 256))
    half = _round_up(pl.cdiv(b8, 2), 256)
    return min(cap, half)


def discriminator_kernel(x_ref, w1_ref, b1_ref, w2_ref, b2_ref, w3_ref, b3_ref,
                         o_ref):
    # Layer 1: (TB, F) @ (F, 512) on the MXU (bf16 in, f32 accumulate).
    z1 = jnp.dot(x_ref[...], w1_ref[...],
                 preferred_element_type=jnp.float32) + b1_ref[...]
    h1 = _leaky_relu(z1)                                   # f32 on the VPU
    # Layer 2: (TB, 512) @ (512, 256).
    z2 = jnp.dot(h1.astype(jnp.bfloat16), w2_ref[...],
                 preferred_element_type=jnp.float32) + b2_ref[...]
    h2 = _leaky_relu(z2)
    # Layer 3: (256 -> 1) as a VPU multiply + XLU lane reduction (keeps the MXU
    # free for the next tile).  Result is written lane-dense as a (1, TB) row.
    s = jnp.sum(h2 * w3_ref[...], axis=-1)                 # (TB,)
    o_ref[...] = (s[None, :] + b3_ref[...]).astype(o_ref.dtype)


def discriminator_forward(x, params, *, block_b=1024):
    """x: (B, n_features). Returns (B,) float32 (matches .view(-1,1).squeeze(1))."""
    w1, b1, w2, b2, w3, b3 = params
    B, F = x.shape

    TB = _choose_tile(B, block_b)
    B_pad = _round_up(B, TB)
    grid = (B_pad // TB,)

    # bf16 x halves the only per-step HBM->VMEM stream (fuses with pad under jit).
    x = x.astype(jnp.bfloat16)
    if B_pad != B:
        x = jnp.pad(x, ((0, B_pad - B), (0, 0)))

    def resident(shape):
        # Constant block index -> DMA'd once, VMEM-resident across the grid.
        return pl.BlockSpec(shape, lambda i: tuple(0 for _ in shape))

    weight_bytes = sum(int(a.size) * a.dtype.itemsize
                       for a in (w1, b1, w2, b2, w3, b3))

    # VMEM budget: double-buffered x/out tiles + (double-buffered) residents
    # + f32 intermediates (h1, h2) + headroom.  Floor 32 MiB, cap 64 MiB (v7x).
    x_tile = TB * F * 2
    out_tile = TB * 4
    interm = TB * (512 + 256) * 4
    vmem_est = 2 * (x_tile + out_tile + weight_bytes) + 2 * interm + (8 << 20)
    vmem_limit = int(min(max(vmem_est, 32 << 20), 64 << 20))

    flops = 2 * B_pad * (F * 512 + 512 * 256 + 256)
    bytes_accessed = (2 * B_pad * F          # x in (bf16)
                      + 4 * B_pad            # out (f32)
                      + weight_bytes)

    out = pl.pallas_call(
        discriminator_kernel,
        out_shape=jax.ShapeDtypeStruct((1, B_pad), jnp.float32),
        grid=grid,
        in_specs=[
            pl.BlockSpec((TB, F), lambda i: (i, 0)),     # x: batch-tiled
            resident(w1.shape), resident(b1.shape),      # layer 1 (resident)
            resident(w2.shape), resident(b2.shape),      # layer 2 (resident)
            resident(w3.shape), resident(b3.shape),      # layer 3 (resident)
        ],
        out_specs=pl.BlockSpec((1, TB), lambda i: (0, i)),   # lane-dense row
        compiler_params=pltpu.CompilerParams(
            dimension_semantics=("parallel",),
            vmem_limit_bytes=vmem_limit),
        cost_estimate=pl.CostEstimate(flops=flops, transcendentals=0,
                                      bytes_accessed=bytes_accessed),
    )(x, w1, b1, w2, b2, w3, b3)

    # .view(-1, 1).squeeze(1) -> (B,); drop batch padding.
    return out.reshape(-1)[:B]


def init_params(key, n_features):
    """Deterministic init mimicking nn.Linear's U(-1/sqrt(in), 1/sqrt(in)).

    Layer-1/2 weights are stored transposed as (in, out) and pre-cast to bf16
    (MXU operands, stored once); the final layer's weight is a (1, 256) f32 row
    (for the in-kernel lane reduction); biases are (1, out) f32."""
    dims = [(n_features, 512), (512, 256), (256, 1)]
    params = []
    for li, (fan_in, fan_out) in enumerate(dims):
        key, kw, kb = jax.random.split(key, 3)
        bound = 1.0 / float(fan_in) ** 0.5
        if li == 2:
            w = jax.random.uniform(kw, (1, fan_in), jnp.float32,
                                   minval=-bound, maxval=bound)
        else:
            w = jax.random.uniform(kw, (fan_in, fan_out), jnp.float32,
                                   minval=-bound, maxval=bound).astype(jnp.bfloat16)
        b = jax.random.uniform(kb, (1, fan_out), jnp.float32,
                               minval=-bound, maxval=bound)
        params += [w, b]
    return tuple(params)


def reference_forward(x, params):
    """Pure f32 JAX reference matching the PyTorch module semantics
    (weights up-cast exactly from their stored precision)."""
    w1, b1, w2, b2, w3, b3 = params
    w1 = w1.astype(jnp.float32)
    w2 = w2.astype(jnp.float32)
    z1 = x @ w1 + b1
    h1 = jnp.where(z1 > 0, z1, _NEG_SLOPE * z1)
    z2 = h1 @ w2 + b2
    h2 = jnp.where(z2 > 0, z2, _NEG_SLOPE * z2)
    return (h2 @ w3.T + b3).reshape(-1)


if __name__ == "__main__":
    key = jax.random.PRNGKey(0)
    key, kx1, kx2 = jax.random.split(key, 3)

    n_features = 32
    params = init_params(key, n_features)
    fwd = jax.jit(discriminator_forward)

    # Small single-tile case (B=8 -> TB=8, grid=(1,)).
    x1 = jax.random.normal(kx1, (8, n_features), jnp.float32)
    out1 = jax.block_until_ready(fwd(x1, params))
    ref1 = reference_forward(x1, params)
    assert out1.shape == (8,), out1.shape
    # bf16 MXU inputs (f32 accumulate) -> loosened tolerance vs f32 reference.
    assert jnp.allclose(out1, ref1, atol=5e-2, rtol=5e-2), (out1, ref1)

    # Multi-tile case with batch padding (B=300 -> TB=256, grid=(2,)).
    x2 = jax.random.normal(kx2, (300, n_features), jnp.float32)
    out2 = jax.block_until_ready(fwd(x2, params))
    ref2 = reference_forward(x2, params)
    assert out2.shape == (300,), out2.shape
    assert jnp.allclose(out2, ref2, atol=5e-2, rtol=5e-2), (out2, ref2)

    print("KERNEL_OK")
</pallas_src>

<mosaic_0001>
module attributes {stable_mosaic.version = 11 : i64} {
  func.func @discriminator_kernel(%arg0: i32, %arg1: memref<8x32xbf16, #tpu.memory_space<vmem>>, %arg2: memref<32x512xbf16, #tpu.memory_space<vmem>>, %arg3: memref<1x512xf32, #tpu.memory_space<vmem>>, %arg4: memref<512x256xbf16, #tpu.memory_space<vmem>>, %arg5: memref<1x256xf32, #tpu.memory_space<vmem>>, %arg6: memref<1x256xf32, #tpu.memory_space<vmem>>, %arg7: memref<1x1xf32, #tpu.memory_space<vmem>>, %arg8: memref<1x8xf32, #tpu.memory_space<vmem>>) attributes {dimension_semantics = [#tpu.dimension_semantics<parallel>], iteration_bounds = array<i64: 1>, scalar_prefetch = 0 : i64, scratch_operands = 0 : i64, tpu.core_type = #tpu.core_type<tc>, window_params = [{transform_indices = @transform_0, window_bounds = array<i64: 8, 32>}, {pipeline_mode = #tpu.pipeline_mode<synchronous>, transform_indices = @transform_1, window_bounds = array<i64: 32, 512>}, {pipeline_mode = #tpu.pipeline_mode<synchronous>, transform_indices = @transform_2, window_bounds = array<i64: 1, 512>}, {pipeline_mode = #tpu.pipeline_mode<synchronous>, transform_indices = @transform_3, window_bounds = array<i64: 512, 256>}, {pipeline_mode = #tpu.pipeline_mode<synchronous>, transform_indices = @transform_4, window_bounds = array<i64: 1, 256>}, {pipeline_mode = #tpu.pipeline_mode<synchronous>, transform_indices = @transform_5, window_bounds = array<i64: 1, 256>}, {pipeline_mode = #tpu.pipeline_mode<synchronous>, transform_indices = @transform_6, window_bounds = array<i64: 1, 1>}, {transform_indices = @transform_7, window_bounds = array<i64: 1, 8>}]} {
    %c0 = arith.constant 0 : index
    %c0_0 = arith.constant 0 : index
    %0 = vector.load %arg1[%c0, %c0_0] : memref<8x32xbf16, #tpu.memory_space<vmem>>, vector<8x32xbf16>
    %c0_1 = arith.constant 0 : index
    %c0_2 = arith.constant 0 : index
    %1 = vector.load %arg2[%c0_1, %c0_2] : memref<32x512xbf16, #tpu.memory_space<vmem>>, vector<32x512xbf16>
    %cst = arith.constant dense<0.000000e+00> : vector<8x512xf32>
    %2 = tpu.matmul %0, %1, %cst {dimension_numbers = #tpu.dot_dimension_numbers<[1], [0], [0], [1], [0, 0, 1, 1], [], []>} : vector<8x32xbf16>, vector<32x512xbf16>, vector<8x512xf32> -> vector<8x512xf32>
    %c0_3 = arith.constant 0 : index
    %c0_4 = arith.constant 0 : index
    %3 = vector.load %arg3[%c0_3, %c0_4] : memref<1x512xf32, #tpu.memory_space<vmem>>, vector<1x512xf32>
    %4 = vector.broadcast %3 : vector<1x512xf32> to vector<8x512xf32>
    %5 = arith.addf %2, %4 : vector<8x512xf32>
    %cst_5 = arith.constant 2.000000e-01 : f32
    %6 = vector.broadcast %cst_5 : f32 to vector<8x512xf32>
    %7 = arith.mulf %6, %5 : vector<8x512xf32>
    %8 = arith.maximumf %5, %7 : vector<8x512xf32>
    %9 = arith.truncf %8 : vector<8x512xf32> to vector<8x512xbf16>
    %c0_6 = arith.constant 0 : index
    %c0_7 = arith.constant 0 : index
    %10 = vector.load %arg4[%c0_6, %c0_7] : memref<512x256xbf16, #tpu.memory_space<vmem>>, vector<512x256xbf16>
    %cst_8 = arith.constant dense<0.000000e+00> : vector<8x256xf32>
    %11 = tpu.matmul %9, %10, %cst_8 {dimension_numbers = #tpu.dot_dimension_numbers<[1], [0], [0], [1], [0, 0, 1, 1], [], []>} : vector<8x512xbf16>, vector<512x256xbf16>, vector<8x256xf32> -> vector<8x256xf32>
    %c0_9 = arith.constant 0 : index
    %c0_10 = arith.constant 0 : index
    %12 = vector.load %arg5[%c0_9, %c0_10] : memref<1x256xf32, #tpu.memory_space<vmem>>, vector<1x256xf32>
    %13 = vector.broadcast %12 : vector<1x256xf32> to vector<8x256xf32>
    %14 = arith.addf %11, %13 : vector<8x256xf32>
    %cst_11 = arith.constant 2.000000e-01 : f32
    %15 = vector.broadcast %cst_11 : f32 to vector<8x256xf32>
    %16 = arith.mulf %15, %14 : vector<8x256xf32>
    %17 = arith.maximumf %14, %16 : vector<8x256xf32>
    %c0_12 = arith.constant 0 : index
    %c0_13 = arith.constant 0 : index
    %18 = vector.load %arg6[%c0_12, %c0_13] : memref<1x256xf32, #tpu.memory_space<vmem>>, vector<1x256xf32>
    %19 = vector.broadcast %18 : vector<1x256xf32> to vector<8x256xf32>
    %20 = arith.mulf %17, %19 : vector<8x256xf32>
    %cst_14 = arith.constant dense<0.000000e+00> : vector<8xf32>
    %21 = vector.multi_reduction <add>, %20, %cst_14 [1] : vector<8x256xf32> to vector<8xf32>
    %22 = vector.shape_cast %21 : vector<8xf32> to vector<1x8xf32>
    %c0_15 = arith.constant 0 : index
    %c0_16 = arith.constant 0 : index
    %23 = vector.load %arg7[%c0_15, %c0_16] : memref<1x1xf32, #tpu.memory_space<vmem>>, vector<1x1xf32>
    %24 = vector.broadcast %23 : vector<1x1xf32> to vector<1x8xf32>
    %25 = arith.addf %22, %24 : vector<1x8xf32>
    %c0_17 = arith.constant 0 : index
    %c0_18 = arith.constant 0 : index
    %26 = vector.load %arg8[%c0_17, %c0_18] : memref<1x8xf32, #tpu.memory_space<vmem>>, vector<1x8xf32>
    tpu.vector_store %arg8[%c0_17, %c0_18], %25 {strides = array<i32>} : memref<1x8xf32, #tpu.memory_space<vmem>>, vector<1x8xf32>,
    return
  }
  func.func @transform_0(%arg0: i32) -> (i32, i32) {
    %c0_i32 = arith.constant 0 : i32
    %c0_i32_0 = arith.constant 0 : i32
    return %arg0, %c0_i32 : i32, i32
  }
  func.func @transform_1(%arg0: i32) -> (i32, i32) {
    %c0_i32 = arith.constant 0 : i32
    %c0_i32_0 = arith.constant 0 : i32
    %c0_i32_1 = arith.constant 0 : i32
    return %c0_i32, %c0_i32_0 : i32, i32
  }
  func.func @transform_2(%arg0: i32) -> (i32, i32) {
    %c0_i32 = arith.constant 0 : i32
    %c0_i32_0 = arith.constant 0 : i32
    %c0_i32_1 = arith.constant 0 : i32
    return %c0_i32, %c0_i32_0 : i32, i32
  }
  func.func @transform_3(%arg0: i32) -> (i32, i32) {
    %c0_i32 = arith.constant 0 : i32
    %c0_i32_0 = arith.constant 0 : i32
    %c0_i32_1 = arith.constant 0 : i32
    return %c0_i32, %c0_i32_0 : i32, i32
  }
  func.func @transform_4(%arg0: i32) -> (i32, i32) {
    %c0_i32 = arith.constant 0 : i32
    %c0_i32_0 = arith.constant 0 : i32
    %c0_i32_1 = arith.constant 0 : i32
    return %c0_i32, %c0_i32_0 : i32, i32
  }
  func.func @transform_5(%arg0: i32) -> (i32, i32) {
    %c0_i32 = arith.constant 0 : i32
    %c0_i32_0 = arith.constant 0 : i32
    %c0_i32_1 = arith.constant 0 : i32
    return %c0_i32, %c0_i32_0 : i32, i32
  }
  func.func @transform_6(%arg0: i32) -> (i32, i32) {
    %c0_i32 = arith.constant 0 : i32
    %c0_i32_0 = arith.constant 0 : i32
    %c0_i32_1 = arith.constant 0 : i32
    return %c0_i32, %c0_i32_0 : i32, i32
  }
  func.func @transform_7(%arg0: i32) -> (i32, i32) {
    %c0_i32 = arith.constant 0 : i32
    %c0_i32_0 = arith.constant 0 : i32
    return %c0_i32, %arg0 : i32, i32
  }
}

</mosaic_0001>

<bundles_post_ra>
// kernel: discriminator_forward.1
= control target key start
LH: loop header
LB: loop body
LE: loop exit
PB: predicated region body
PF: predicated region fallthrough
CT: control target
= control target key end

     0   :  { %s1144_s0 = inlined_call_operand.vmem [shape: bf16[8,32], index: 0, kind: input, shape index: {}]   ;;  %s1145_s1 = inlined_call_operand.hbm [shape: bf16[32,512], index: 1, kind: input, shape index: {}]   ;;  %s1146_s2 = inlined_call_operand.vmem [shape: f32[1,512], index: 2, kind: input, shape index: {}]   ;;  %s1147_s3 = inlined_call_operand.hbm [shape: bf16[512,256], index: 3, kind: input, shape index: {}]   ;;  %s1148_s4 = inlined_call_operand.vmem [shape: f32[1,256], index: 4, kind: input, shape index: {}]   ;;  %s1149_s5 = inlined_call_operand.vmem [shape: f32[1,256], index: 5, kind: input, shape index: {}]   ;;  %s1150_s6 = inlined_call_operand.<no memory space> [shape: f32[1,1], index: 6, kind: input, shape index: {}]   ;;  %s1151_s7 = inlined_call_operand.hbm [shape: f32[1,8], index: 7, kind: output, shape index: {}]  }
   0x1   :  { %v12_v0 = vstv %s1150_s6 }
   0x2   :  { %13 = vst [vmem:[#allocation2] sm:$0x1] %v12_v0 }
   0x3   :  { %14 = vsyncpa [#allocation4], 0 }
   0x4   :  { %15 = vsyncpa [#allocation7], 0 }
   0x5   :  { %16 = vsyncpa [#allocation5], 0  ;;  %s1030_s26 = smov [#allocation3]   ;;  %s958_s30 = scalar_lea.hbm %s1145_s1, 1024 }
   0x6   :  { %s24_s27 = sshll.u32 %s1030_s26, 4  ;;  %p959_p0 = scmp.ne.s32.totalorder %s1145_s1, %s958_s30  ;;  %s25_s27 = int_to_ptr.vmem [resolvable:$true] %s24_s27 }
   0x7   :  { %p962_p1 = scmp.lt.u32.totalorder %s958_s30, %s1145_s1 }
   0x9   :  { %p964_p2 = pnand %p962_p1, %p959_p0 }
   0xb   :  { %967 = shalt.err (!%p964_p2)
}
   0xc   :  { %s968_s6 = scalar_lea.vmem %s25_s27, 1024  ;;  %p973_p4 = scmp.lt.s32.totalorder %s25_s27, %s25_s27 }
   0xd   :  { %p969_p3 = scmp.ne.s32.totalorder %s25_s27, %s968_s6  ;;  %p974_p5 = scmp.lt.s32.totalorder %s968_s6, %s968_s6 }
   0xf   :  { %p975_p6 = por %p974_p5, %p973_p4 }
  0x11   :  { %p976_p7 = pnand %p975_p6, %p969_p3 }
  0x13   :  { %979 = shalt.err (!%p976_p7)
}
  0x14   :  { %s1031_s12 = smov 256   ;;  %s1032_s13 = smov 16  }
  0x15   :  { %30 = dma.hbm_to_vmem [thread:$0]  %s1145_s1, 1024, %s25_s27, [#allocation4], %s1031_s12, %s1031_s12, %s1032_s13  }
  0x16   :  { %s1033_s16 = smov [#allocation6]   ;;  %s980_s20 = scalar_lea.hbm %s1147_s3, 8192 }
  0x17   :  { %s38_s17 = sshll.u32 %s1033_s16, 4  ;;  %p981_p8 = scmp.ne.s32.totalorder %s1147_s3, %s980_s20  ;;  %s39_s17 = int_to_ptr.vmem [resolvable:$true] %s38_s17 }
  0x18   :  { %p984_p9 = scmp.lt.u32.totalorder %s980_s20, %s1147_s3 }
  0x1a   :  { %p986_p10 = pnand %p984_p9, %p981_p8 }
  0x1c   :  { %989 = shalt.err (!%p986_p10)
}
  0x1d   :  { %s990_s25 = scalar_lea.vmem %s39_s17, 8192  ;;  %p995_p12 = scmp.lt.s32.totalorder %s39_s17, %s39_s17 }
  0x1e   :  { %p991_p11 = scmp.ne.s32.totalorder %s39_s17, %s990_s25  ;;  %p996_p13 = scmp.lt.s32.totalorder %s990_s25, %s990_s25 }
  0x20   :  { %p997_p0 = por %p996_p13, %p995_p12 }
  0x22   :  { %p998_p1 = pnand %p997_p0, %p991_p11 }
  0x24   :  { %1001 = shalt.err (!%p998_p1)
}
  0x25   :  { %s1034_s1 = smov 128   ;;  %s1035_s26 = smov 8  }
  0x26   :  { %44 = dma.hbm_to_vmem [thread:$0]  %s1147_s3, 8192, %s39_s17, [#allocation7], %s1034_s1, %s1034_s1, %s1035_s26  }
  0x27   :  { %1024 = dma.done.wait [#allocation4], 1024  }
  0x28   :  { %1025 = vsyncadd [#allocation4], 4294966272 }
  0x29   :  { %1026 = dma.done.wait [#allocation7], 8192  }
  0x2a   :  { %1027 = vsyncadd [#allocation7], 4294959104  ;;  %v1036_v1 = vmov 0   ;;  %v850_v2 = vld [vmem:[#allocation3 + $0x4] ss:$16 sps:$4 sm:$0xff]   ;;  %vm129_vm0 = vcmask 261120  }
  0x2b   :  { %165 = vmatprep.mubr.bf16.mxu0 %v1036_v1  ;;  %206 = vmatprep.mubr.bf16.mxu1 %v1036_v1  ;;  %v852_v3 = vld [vmem:[#allocation3 + $0xc] ss:$16 sps:$4 sm:$0xff]   ;;  %v854_v4 = vld [vmem:[#allocation3] ss:$16 sps:$4 sm:$0xff]   ;;  %v855_v5 = vld [vmem:[#allocation3 + $0x8] ss:$16 sps:$4 sm:$0xff]  }
  0x2c   :  { %849 = vset.pattern.permute.xlu0 %v1036_v1  ;;  %133 = vmatprep.subr.bf16.mxu0 %v850_v2  ;;  %v856_v6 = vld [vmem:[#allocation3 + $0x24] ss:$16 sps:$4 sm:$0xff]   ;;  %v858_v7 = vld [vmem:[#allocation3 + $0x2c] ss:$16 sps:$4 sm:$0xff]   ;;  %v860_v8 = vld [vmem:[#allocation3 + $0x20] ss:$16 sps:$4 sm:$0xff]  }
  0x2d   :  { %174 = vmatprep.subr.bf16.mxu1 %v852_v3  ;;  %134 = vmatpush1.bf16.msra.mxu0 %v854_v4  ;;  %v861_v9 = vld [vmem:[#allocation3 + $0x28] ss:$16 sps:$4 sm:$0xff]   ;;  %v58_v10 = vld [vmem:[%s1144_s0] sm:$0xf]  ;;  %v864_v12 = vld [vmem:[#allocation6 + $0x4] ss:$8 sps:$4 sm:$0xff]  }
  0x2e   :  { %175 = vmatpush1.bf16.msra.mxu1 %v855_v5  ;;  %135 = vmatprep.subr.bf16.mxu0 %v856_v6  ;;  %v862_v11 = vld [vmem:[#allocation6] ss:$8 sps:$4 sm:$0xff]   ;;  %v867_v14 = vld [vmem:[#allocation6 + $0x104] ss:$8 sps:$4 sm:$0xff]   ;;  %v870_v15 = vld [vmem:[#allocation6 + $0x14] ss:$8 sps:$4 sm:$0xff]  }
  0x2f   :  { %176 = vmatprep.subr.bf16.mxu1 %v858_v7  ;;  %v865_v13 = vld [vmem:[#allocation6 + $0x100] ss:$8 sps:$4 sm:$0xff]   ;;  %v873_v16 = vld [vmem:[#allocation6 + $0x114] ss:$8 sps:$4 sm:$0xff]   ;;  %v868_v17 = vld [vmem:[#allocation6 + $0x10] ss:$8 sps:$4 sm:$0xff]  }
  0x30   :  { %v871_v18 = vld [vmem:[#allocation6 + $0x110] ss:$8 sps:$4 sm:$0xff]   ;;  %v876_v19 = vld [vmem:[#allocation6 + $0x24] ss:$8 sps:$4 sm:$0xff]   ;;  %v874_v21 = vld [vmem:[#allocation6 + $0x20] ss:$8 sps:$4 sm:$0xff]  }
  0x31   :  { %136 = vmatpush1.bf16.msra.mxu0 %v860_v8  ;;  %v879_v20 = vld [vmem:[#allocation6 + $0x124] ss:$8 sps:$4 sm:$0xff]   ;;  %v877_v22 = vld [vmem:[#allocation6 + $0x120] ss:$8 sps:$4 sm:$0xff]   ;;  %v882_v23 = vld [vmem:[#allocation6 + $0x34] ss:$8 sps:$4 sm:$0xff]  }
  0x32   :  { %177 = vmatpush1.bf16.msra.mxu1 %v861_v9  ;;  %664 = vmatprep.subr.bf16.mxu0 %v867_v14  ;;  %v885_v24 = vld [vmem:[#allocation6 + $0x134] ss:$8 sps:$4 sm:$0xff]   ;;  %v880_v25 = vld [vmem:[#allocation6 + $0x30] ss:$8 sps:$4 sm:$0xff]   ;;  %v888_v27 = vld [vmem:[#allocation6 + $0x44] ss:$8 sps:$4 sm:$0xff]  }
  0x33   :  { %623 = vmatprep.subr.bf16.mxu1 %v864_v12  ;;  %v883_v26 = vld [vmem:[#allocation6 + $0x130] ss:$8 sps:$4 sm:$0xff]   ;;  %v891_v28 = vld [vmem:[#allocation6 + $0x144] ss:$8 sps:$4 sm:$0xff]   ;;  %v886_v29 = vld [vmem:[#allocation6 + $0x40] ss:$8 sps:$4 sm:$0xff]  }
  0x34   :  { %771 = vmatmul.mubr.msk.bf16.vlgmr.msra.gmra.mrb[0].mxu0 %vm129_vm0, %v58_v10  ;;  %v889_v30 = vld [vmem:[#allocation6 + $0x140] ss:$8 sps:$4 sm:$0xff]   ;;  %v894_v31 = vld [vmem:[#allocation6 + $0x54] ss:$8 sps:$4 sm:$0xff]   ;;  %v892_v33 = vld [vmem:[#allocation6 + $0x50] ss:$8 sps:$4 sm:$0xff]  }
  0x35   :  { %772 = vmatmul.mubr.msk.bf16.vlgmr.msra.gmra.mrb[0].mxu1 %vm129_vm0, %v58_v10  ;;  %665 = vmatpush1.bf16.msra.mxu0 %v865_v13  ;;  %v897_v32 = vld [vmem:[#allocation6 + $0x154] ss:$8 sps:$4 sm:$0xff]   ;;  %v895_v34 = vld [vmem:[#allocation6 + $0x150] ss:$8 sps:$4 sm:$0xff]   ;;  %v900_v35 = vld [vmem:[#allocation6 + $0x64] ss:$8 sps:$4 sm:$0xff]  }
  0x36   :  { %624 = vmatpush1.bf16.msra.mxu1 %v862_v11  ;;  %666 = vmatprep.subr.bf16.mxu0 %v873_v16  ;;  %v903_v36 = vld [vmem:[#allocation6 + $0x164] ss:$8 sps:$4 sm:$0xff]   ;;  %v898_v37 = vld [vmem:[#allocation6 + $0x60] ss:$8 sps:$4 sm:$0xff]   ;;  %v906_v39 = vld [vmem:[#allocation6 + $0x74] ss:$8 sps:$4 sm:$0xff]   ;;  %v69_v11 = vlaneseq }
  0x37   :  { %625 = vmatprep.subr.bf16.mxu1 %v870_v15  ;;  %v901_v38 = vld [vmem:[#allocation6 + $0x160] ss:$8 sps:$4 sm:$0xff]   ;;  %v909_v40 = vld [vmem:[#allocation6 + $0x174] ss:$8 sps:$4 sm:$0xff]   ;;  %v904_v41 = vld [vmem:[#allocation6 + $0x70] ss:$8 sps:$4 sm:$0xff]  }
  0x38   :  { %v907_v42 = vld [vmem:[#allocation6 + $0x170] ss:$8 sps:$4 sm:$0xff]   ;;  %v912_v43 = vld [vmem:[#allocation6 + $0x84] ss:$8 sps:$4 sm:$0xff]   ;;  %v910_v45 = vld [vmem:[#allocation6 + $0x80] ss:$8 sps:$4 sm:$0xff]  }
  0x39   :  { %667 = vmatpush1.bf16.msra.mxu0 %v871_v18  ;;  %v915_v44 = vld [vmem:[#allocation6 + $0x184] ss:$8 sps:$4 sm:$0xff]   ;;  %v913_v46 = vld [vmem:[#allocation6 + $0x180] ss:$8 sps:$4 sm:$0xff]   ;;  %v918_v47 = vld [vmem:[#allocation6 + $0x94] ss:$8 sps:$4 sm:$0xff]  }
  0x3a   :  { %626 = vmatpush1.bf16.msra.mxu1 %v868_v17  ;;  %668 = vmatprep.subr.bf16.mxu0 %v879_v20  ;;  %v921_v48 = vld [vmem:[#allocation6 + $0x194] ss:$8 sps:$4 sm:$0xff]   ;;  %v916_v49 = vld [vmem:[#allocation6 + $0x90] ss:$8 sps:$4 sm:$0xff]   ;;  %v924_v51 = vld [vmem:[#allocation6 + $0xa4] ss:$8 sps:$4 sm:$0xff]  }
  0x3b   :  { %627 = vmatprep.subr.bf16.mxu1 %v876_v19  ;;  %v919_v50 = vld [vmem:[#allocation6 + $0x190] ss:$8 sps:$4 sm:$0xff]   ;;  %v927_v52 = vld [vmem:[#allocation6 + $0x1a4] ss:$8 sps:$4 sm:$0xff]   ;;  %v922_v53 = vld [vmem:[#allocation6 + $0xa0] ss:$8 sps:$4 sm:$0xff]  }
  0x3c   :  { %v925_v54 = vld [vmem:[#allocation6 + $0x1a0] ss:$8 sps:$4 sm:$0xff]   ;;  %v930_v55 = vld [vmem:[#allocation6 + $0xb4] ss:$8 sps:$4 sm:$0xff]   ;;  %v928_v57 = vld [vmem:[#allocation6 + $0xb0] ss:$8 sps:$4 sm:$0xff]  }
  0x3d   :  { %669 = vmatpush1.bf16.msra.mxu0 %v877_v22  ;;  %v933_v56 = vld [vmem:[#allocation6 + $0x1b4] ss:$8 sps:$4 sm:$0xff]   ;;  %v931_v58 = vld [vmem:[#allocation6 + $0x1b0] ss:$8 sps:$4 sm:$0xff]   ;;  %v936_v59 = vld [vmem:[#allocation6 + $0xc4] ss:$8 sps:$4 sm:$0xff]  }
  0x3e   :  { %628 = vmatpush1.bf16.msra.mxu1 %v874_v21  ;;  %670 = vmatprep.subr.bf16.mxu0 %v885_v24  ;;  %v939_v60 = vld [vmem:[#allocation6 + $0x1c4] ss:$8 sps:$4 sm:$0xff]   ;;  %v934_v61 = vld [vmem:[#allocation6 + $0xc0] ss:$8 sps:$4 sm:$0xff]   ;;  %v942_v63 = vld [vmem:[#allocation6 + $0xd4] ss:$8 sps:$4 sm:$0xff]  }
  0x3f   :  { %629 = vmatprep.subr.bf16.mxu1 %v882_v23  ;;  %v937_v62 = vld [vmem:[#allocation6 + $0x1c0] ss:$8 sps:$4 sm:$0xff]   ;;  %v945_v0 = vld [vmem:[#allocation6 + $0x1d4] ss:$8 sps:$4 sm:$0xff]   ;;  %v940_v1 = vld [vmem:[#allocation6 + $0xd0] ss:$8 sps:$4 sm:$0xff]  }
  0x40   :  { %v943_v2 = vld [vmem:[#allocation6 + $0x1d0] ss:$8 sps:$4 sm:$0xff]   ;;  %v948_v3 = vld [vmem:[#allocation6 + $0xe4] ss:$8 sps:$4 sm:$0xff]   ;;  %v946_v5 = vld [vmem:[#allocation6 + $0xe0] ss:$8 sps:$4 sm:$0xff]  }
  0x41   :  { %671 = vmatpush1.bf16.msra.mxu0 %v883_v26  ;;  %v951_v4 = vld [vmem:[#allocation6 + $0x1e4] ss:$8 sps:$4 sm:$0xff]   ;;  %v949_v6 = vld [vmem:[#allocation6 + $0x1e0] ss:$8 sps:$4 sm:$0xff]   ;;  %v954_v7 = vld [vmem:[#allocation6 + $0xf4] ss:$8 sps:$4 sm:$0xff]  }
  0x42   :  { %630 = vmatpush1.bf16.msra.mxu1 %v880_v25  ;;  %672 = vmatprep.subr.bf16.mxu0 %v891_v28  ;;  %v957_v8 = vld [vmem:[#allocation6 + $0x1f4] ss:$8 sps:$4 sm:$0xff]   ;;  %v952_v9 = vld [vmem:[#allocation6 + $0xf0] ss:$8 sps:$4 sm:$0xff]   ;;  %v1109_v12 = vshrl.u32 %v69_v11, 7  ;;  %vm745_vm1 = vcmask 57344  }
  0x43   :  { %631 = vmatprep.subr.bf16.mxu1 %v888_v27  ;;  %v955_v10 = vld [vmem:[#allocation6 + $0x1f0] ss:$8 sps:$4 sm:$0xff]   ;;  %v67_v15 = vld [vmem:[%s1146_s2] sm:$0xf] }
  0x44   :  { %v1112_v13 = vsub.s32 0, %v1109_v12  ;;  %v79_v14 = vsub.s32 2, %v1109_v12  ;;  %v75_v16 = vsub.s32 1, %v1109_v12  ;;  %v83_v17 = vsub.s32 3, %v1109_v12 }
  0x45   :  { %673 = vmatpush1.bf16.msra.mxu0 %v889_v30 }
  0x46   :  { %632 = vmatpush1.bf16.msra.mxu1 %v886_v29  ;;  %674 = vmatprep.subr.bf16.mxu0 %v897_v32  ;;  %v72_v18 = vrot.slane %v67_v15, %v1112_v13  ;;  %v80_v19 = vrot.slane %v67_v15, %v79_v14  ;;  %v76_v20 = vrot.slane %v67_v15, %v75_v16 }
  0x47   :  { %633 = vmatprep.subr.bf16.mxu1 %v894_v31  ;;  %v84_v21 = vrot.slane %v67_v15, %v83_v17 }
  0x49   :  { %675 = vmatpush1.bf16.msra.mxu0 %v895_v34 }
  0x4a   :  { %634 = vmatpush1.bf16.msra.mxu1 %v892_v33  ;;  %676 = vmatprep.subr.bf16.mxu0 %v903_v36 }
  0x4b   :  { %635 = vmatprep.subr.bf16.mxu1 %v900_v35 }
  0x4d   :  { %677 = vmatpush1.bf16.msra.mxu0 %v901_v38 }
  0x4e   :  { %636 = vmatpush1.bf16.msra.mxu1 %v898_v37  ;;  %678 = vmatprep.subr.bf16.mxu0 %v909_v40 }
  0x4f   :  { %637 = vmatprep.subr.bf16.mxu1 %v906_v39 }
  0x51   :  { %679 = vmatpush1.bf16.msra.mxu0 %v907_v42 }
  0x52   :  { %638 = vmatpush1.bf16.msra.mxu1 %v904_v41  ;;  %680 = vmatprep.subr.bf16.mxu0 %v915_v44 }
  0x53   :  { %639 = vmatprep.subr.bf16.mxu1 %v912_v43 }
  0x55   :  { %681 = vmatpush1.bf16.msra.mxu0 %v913_v46  ;;  %v291_v46 = vld [vmem:[%s1148_s4] sm:$0x3]  ;;  %s1037_s4 = smov [#allocation8]  }
  0x56   :  { %640 = vmatpush1.bf16.msra.mxu1 %v910_v45  ;;  %682 = vmatprep.subr.bf16.mxu0 %v921_v48  ;;  %v300_v48 = vrot.slane %v291_v46, %v75_v16 }
  0x57   :  { %641 = vmatprep.subr.bf16.mxu1 %v918_v47  ;;  %v296_v47 = vrot.slane %v291_v46, %v1112_v13 }
  0x59   :  { %683 = vmatpush1.bf16.msra.mxu0 %v919_v50 }
  0x5a   :  { %642 = vmatpush1.bf16.msra.mxu1 %v916_v49  ;;  %684 = vmatprep.subr.bf16.mxu0 %v927_v52 }
  0x5b   :  { %643 = vmatprep.subr.bf16.mxu1 %v924_v51 }
  0x5d   :  { %685 = vmatpush1.bf16.msra.mxu0 %v925_v54 }
  0x5e   :  { %644 = vmatpush1.bf16.msra.mxu1 %v922_v53  ;;  %686 = vmatprep.subr.bf16.mxu0 %v933_v56 }
  0x5f   :  { %645 = vmatprep.subr.bf16.mxu1 %v930_v55 }
  0x61   :  { %687 = vmatpush1.bf16.msra.mxu0 %v931_v58 }
  0x62   :  { %646 = vmatpush1.bf16.msra.mxu1 %v928_v57  ;;  %688 = vmatprep.subr.bf16.mxu0 %v939_v60  ;;  %v709_v57 = vld [vmem:[%s1149_s5] sm:$0x3]  ;;  %s753_s5 = sshll.u32 %s1037_s4, 4  ;;  %s754_s5 = int_to_ptr.vmem [resolvable:$true] %s753_s5 }
  0x63   :  { %647 = vmatprep.subr.bf16.mxu1 %v936_v59  ;;  %s1002_s11 = scalar_lea.vmem %s754_s5, 16  ;;  %s1006_s6 = scalar_lea.vmem %s754_s5, 32 }
  0x64   :  { %p1003_p2 = scmp.ne.s32.totalorder %s754_s5, %s1002_s11  ;;  %p1007_p3 = scmp.lt.s32.totalorder %s754_s5, %s754_s5 }
  0x65   :  { %689 = vmatpush1.bf16.msra.mxu0 %v937_v62  ;;  %p1008_p4 = scmp.lt.s32.totalorder %s1006_s6, %s1002_s11 }
  0x66   :  { %648 = vmatpush1.bf16.msra.mxu1 %v934_v61  ;;  %690 = vmatprep.subr.bf16.mxu0 %v945_v0 }
  0x67   :  { %649 = vmatprep.subr.bf16.mxu1 %v942_v63  ;;  %v714_v63 = vrot.slane %v709_v57, %v1112_v13  ;;  %p1009_p5 = por %p1008_p4, %p1007_p3 }
  0x69   :  { %691 = vmatpush1.bf16.msra.mxu0 %v943_v2  ;;  %p1010_p6 = pnand %p1009_p5, %p1003_p2 }
  0x6a   :  { %650 = vmatpush1.bf16.msra.mxu1 %v940_v1  ;;  %692 = vmatprep.subr.bf16.mxu0 %v951_v4  ;;  %v718_v1 = vrot.slane %v709_v57, %v75_v16 }
  0x6b   :  { %651 = vmatprep.subr.bf16.mxu1 %v948_v3 }
  0x6d   :  { %693 = vmatpush1.bf16.msra.mxu0 %v949_v6 }
  0x6e   :  { %652 = vmatpush1.bf16.msra.mxu1 %v946_v5  ;;  %694 = vmatprep.subr.bf16.mxu0 %v957_v8 }
  0x6f   :  { %653 = vmatprep.subr.bf16.mxu1 %v954_v7  ;;  %v726_v7 = vld [vmem:[#allocation2] sm:$0x1] }
  0x71   :  { %695 = vmatpush1.bf16.msra.mxu0 %v955_v10 }
  0x72   :  { %654 = vmatpush1.bf16.msra.mxu1 %v952_v9  ;;  %v739_v9 = vand.u32 127, %v69_v11 }
  0x74   :  { %v742_v14 = vsub.s32 %v739_v9, %v1109_v12 }
 0x107   :  { %v167_v22 = vpop.f32.mrb[0].mxu0 }
 0x108   :  { %v208_v23 = vpop.f32.mrb[0].mxu1  ;;  %v168_v24 = vadd.f32 %v167_v22, %v72_v18  ;;  %v169_v26 = vpop.f32.mrb[1].mxu0 }
 0x109   :  { %v209_v25 = vadd.f32 %v208_v23, %v80_v19  ;;  %v210_v27 = vpop.f32.mrb[1].mxu1  ;;  %v170_v28 = vadd.f32 %v169_v26, %v76_v20  ;;  %v171_v30 = vpop.f32.mrb[2].mxu0 }
 0x10a   :  { %v211_v29 = vadd.f32 %v210_v27, %v84_v21  ;;  %v212_v31 = vpop.f32.mrb[2].mxu1  ;;  %v215_v32 = vmul.f32 0.2, %v168_v24  ;;  %v172_v34 = vpop.f32.mrb[3].mxu0 }
 0x10b   :  { %v217_v33 = vmul.f32 0.2, %v209_v25  ;;  %v213_v35 = vpop.f32.mrb[3].mxu1  ;;  %v216_v36 = vmul.f32 0.2, %v170_v28 }
 0x10c   :  { %v218_v37 = vmul.f32 0.2, %v211_v29  ;;  %v219_v38 = vmax.f32 %v168_v24, %v215_v32 }
 0x10d   :  { %v221_v39 = vmax.f32 %v209_v25, %v217_v33  ;;  %v220_v40 = vmax.f32 %v170_v28, %v216_v36 }
 0x10e   :  { %v222_v41 = vmax.f32 %v211_v29, %v218_v37  ;;  %v223_v44 = vpack.c.bf16 %v219_v38, %v219_v38 }
 0x10f   :  { %v224_v42 = vpack.c.bf16 %v220_v40, %v220_v40  ;;  %v225_v45 = vpack.c.bf16 %v221_v39, %v221_v39 }
 0x110   :  { %v226_v43 = vpack.c.bf16 %v222_v41, %v222_v41 }
 0x111   :  { %655 = vmatprep.mubr.bf16.mxu1 %v224_v42 }
 0x112   :  { %696 = vmatprep.mubr.bf16.mxu0 %v226_v43  ;;  %656 = vmatmul.mubr.bf16.vlgmr.msra.gmra.mrb[4].mxu1 %v223_v44 }
 0x113   :  { %697 = vmatmul.mubr.bf16.vlgmr.msra.gmra.mrb[4].mxu0 %v225_v45 }
 0x1e5   :  { %v657_v49 = vpop.f32.mrb[4].mxu1 }
 0x1e6   :  { %v698_v50 = vpop.f32.mrb[4].mxu0  ;;  %v658_v51 = vadd.f32 %v657_v49, %v296_v47  ;;  %v659_v52 = vpop.f32.mrb[5].mxu1 }
 0x1e7   :  { %v700_v53 = vpop.f32.mrb[5].mxu0  ;;  %v660_v54 = vadd.f32 %v659_v52, %v300_v48  ;;  %v661_v55 = vpop.f32.mrb[6].mxu1 }
 0x1e8   :  { %v702_v56 = vpop.f32.mrb[6].mxu0  ;;  %v699_v58 = vadd.f32 %v698_v50, %v658_v51  ;;  %v662_v59 = vpop.f32.mrb[7].mxu1 }
 0x1e9   :  { %v703_v60 = vpop.f32.mrb[7].mxu0  ;;  %v701_v61 = vadd.f32 %v700_v53, %v660_v54 }
 0x1ea   :  { %v705_v62 = vmul.f32 0.2, %v699_v58 }
 0x1eb   :  { %v706_v0 = vmul.f32 0.2, %v701_v61 }
 0x1ec   :  { %v707_v2 = vmax.f32 %v699_v58, %v705_v62 }
 0x1ed   :  { %v708_v3 = vmax.f32 %v701_v61, %v706_v0 }
 0x1ee   :  { %v721_v4 = vmul.f32 %v714_v63, %v707_v2 }
 0x1ef   :  { %v722_v5 = vmul.f32 %v718_v1, %v708_v3 }
 0x1f1   :  { %v723_v6 = vadd.f32 %v722_v5, %v721_v4 }
 0x1f3   :  { %724 = vadd.xlane.f32.xlu0 %v723_v6 }
 0x209   :  { %729 = vperm.xlu0 %849, %v726_v7  }
 0x280   :  { %v725_v8 = vpop.xlane.xlu0 %724 }
 0x288   :  { %v730_v10 = vpop.permute.xlu0 %729 }
 0x289   :  { %v735_v15 = vrot.slane %v730_v10, %v1112_v13 }
 0x28b   :  { %v736_v17 = vadd.f32 %v735_v15, %v725_v8 }
 0x28d   :  { %v743_v16 = vrot.slane %v736_v17, %v742_v14 }
 0x28f   :  { %746 = vst.msk [vmem:[#allocation8] sm:$0x1] %vm745_vm1, %v743_v16 }
 0x290   :  { %1013 = shalt.err (!%p1010_p6)
}
 0x291   :  { %s1014_s14 = scalar_lea.hbm %s1151_s7, 16 }
 0x292   :  { %p1015_p7 = scmp.ne.s32.totalorder %s1151_s7, %s1014_s14  ;;  %p1018_p8 = scmp.lt.u32.totalorder %s1014_s14, %s1151_s7 }
 0x294   :  { %p1020_p9 = pnand %p1018_p8, %p1015_p7 }
 0x296   :  { %1023 = shalt.err (!%p1020_p9)
}
 0x297   :  { %756 = dma.vmem_to_hbm [thread:$0]  %s754_s5, 16, %s1151_s7, [#allocation5]  }
 0x298   :  { %1028 = dma.done.wait [#allocation5], 16  }
 0x299   :  { %1029 = vsyncadd [#allocation5], 4294967280 }
 0x29a   :  { %760 = vsyncpa [#allocation4], 1 }
 0x29b   :  { %761 = vsyncpa [#allocation7], 1 }
 0x29c   :  { %762 = vsyncpa [#allocation5], 1 }

</bundles_post_ra>
